<compile_context>
chip_gen: v5e
topology: v5e:2x2
jax: 0.10.0
libtpu: 0.0.40
codegen_flags: <defaults>
</compile_context>

<pallas_src>
import numpy as np
import jax
import jax.numpy as jnp
from jax.experimental import pallas as pl
from jax.experimental.pallas import tpu as pltpu


# ----------------------------------------------------------------------------
# math helpers
# ----------------------------------------------------------------------------
def _layer_norm(h, gamma, beta, eps=1e-5):
    # F.layer_norm over the last dim (biased variance), then affine.
    mu = jnp.mean(h, axis=-1, keepdims=True)
    var = jnp.mean((h - mu) ** 2, axis=-1, keepdims=True)
    return (h - mu) * jax.lax.rsqrt(var + eps) * gamma + beta


def _ln_no_affine(h, eps=1e-5):
    # LayerNorm with the affine folded into the *next* Linear (done in wrapper).
    mu = jnp.mean(h, axis=-1, keepdims=True)
    var = jnp.mean((h - mu) ** 2, axis=-1, keepdims=True)
    return (h - mu) * jax.lax.rsqrt(var + eps)


def _round_up(n, k):
    return ((n + k - 1) // k) * k


# ----------------------------------------------------------------------------
# Pallas kernel: whole MLP hot path (3 matmuls + SiLU + LN stats) per row tile.
# ----------------------------------------------------------------------------
def _radial_kernel(x_ref,
                   w1_ref, b1_ref,
                   w2_ref, b2_ref,
                   w3_ref, b3_ref,
                   out_ref):
    x = x_ref[...]

    # Linear 1 + SiLU + LayerNorm (stats only; affine folded into w2/b2).
    # jax.nn.sigmoid lowers to the tanh-based logistic on TPU (single EUP op).
    h = jnp.dot(x, w1_ref[...], preferred_element_type=jnp.float32) + b1_ref[...]
    h = h * jax.nn.sigmoid(h)
    h = _ln_no_affine(h)

    # Linear 2 (LN1-affine folded) + SiLU + LayerNorm (stats only)
    h = jnp.dot(h, w2_ref[...], preferred_element_type=jnp.float32) + b2_ref[...]
    h = h * jax.nn.sigmoid(h)
    h = _ln_no_affine(h)

    # Final projection (LN2-affine folded) to nc_out * nc_in
    out_ref[...] = (
        jnp.dot(h, w3_ref[...], preferred_element_type=jnp.float32) + b3_ref[...]
    )


# ----------------------------------------------------------------------------
# wrapper
# ----------------------------------------------------------------------------
def radial_forward(feat, params, nc_in, nc_out, *, row_tile=2048,
                   input_dtype=jnp.float32):
    """feat: (..., edge_dim + 1) -> (..., nc_out, nc_in)."""
    (w1, b1, g1, be1, w2, b2, g2, be2, w3, b3) = params
    *batch_shape, d_in = feat.shape
    hidden = w1.shape[1]
    d_out = w3.shape[1]

    # Fold LayerNorm affine (gamma, beta) into the following Linear:
    #   (ln(h) * g + be) @ W + b  ==  ln(h) @ (g[:, None] * W) + (be @ W + b)
    w2f = (g1.reshape(hidden, 1) * w2).astype(jnp.float32)
    b2f = (be1 @ w2 + b2).astype(jnp.float32)
    w3f = (g2.reshape(hidden, 1) * w3).astype(jnp.float32)
    b3f = (be2 @ w3 + b3).astype(jnp.float32)

    # Only the HBM-resident input (and matching first-layer weight) uses the
    # optional bf16 storage; all accumulation / LN math stays f32.
    w1c = w1.astype(input_dtype)
    b1c = b1.astype(jnp.float32)
    x2d = feat.reshape(-1, d_in).astype(input_dtype)
    m = x2d.shape[0]

    # Row tiling.  Granularity follows the sublane packing of the input dtype
    # (8 rows for f32, 16 for bf16).  Big tiles amortize the ~0.35 us/step grid
    # overhead; clamps keep >= 4 grid steps (v7x megacore) and avoid
    # over-covering tiny inputs.  Ragged tails are handled by Pallas's masked
    # partial last block -- no wrapper pad/slice.
    gran = 8 * (4 // np.dtype(input_dtype).itemsize)
    row_tile = max(gran, _round_up(int(row_tile), gran))
    row_tile = min(row_tile, max(gran, _round_up(pl.cdiv(m, 4), gran)))
    row_tile = min(row_tile, max(gran, _round_up(m, gran)))
    grid = (pl.cdiv(m, row_tile),)

    # Scoped-VMEM override only when the double-buffered working set would
    # exceed v5e's 16 MiB default (cap well under v7x's 64 MiB physical VMEM).
    lane = 128
    est_vmem = (2 * row_tile * lane * (np.dtype(input_dtype).itemsize + 4)  # x + out, 2 bufs
                + 3 * row_tile * lane * 4                                   # f32 intermediates
                + (1 << 20))                                                # weights + slack
    vmem_limit = None
    if est_vmem > 14 * 1024 * 1024:
        vmem_limit = int(min(est_vmem + (8 << 20), 48 * 1024 * 1024))

    rows = lambda i: (i, 0)     # tile over rows only
    whole = lambda i: (0, 0)    # constant block index -> stays VMEM-resident

    out2d = pl.pallas_call(
        _radial_kernel,
        out_shape=jax.ShapeDtypeStruct((m, d_out), jnp.float32),
        grid=grid,
        in_specs=[
            pl.BlockSpec((row_tile, d_in), rows),
            pl.BlockSpec((d_in, hidden), whole),
            pl.BlockSpec((1, hidden), whole),
            pl.BlockSpec((hidden, hidden), whole),
            pl.BlockSpec((1, hidden), whole),
            pl.BlockSpec((hidden, d_out), whole),
            pl.BlockSpec((1, d_out), whole),
        ],
        out_specs=pl.BlockSpec((row_tile, d_out), rows),
        compiler_params=pltpu.CompilerParams(
            dimension_semantics=("parallel",),
            vmem_limit_bytes=vmem_limit),
    )(x2d, w1c, b1c, w2f, b2f, w3f, b3f)

    # rearrange '... (lo li) -> ... lo li' (li=nc_in, lo=nc_out); row-major, free.
    return out2d.reshape(*batch_shape, nc_out, nc_in)


# ----------------------------------------------------------------------------
# params + plain-JAX reference (mirrors the PyTorch forward exactly)
# ----------------------------------------------------------------------------
def init_radial_params(key, edge_dim, nc_in, nc_out, hidden=64):
    """nn.Linear-style init (uniform +/- 1/sqrt(fan_in)); LN gamma=1, beta=0."""
    d_in = edge_dim + 1
    d_out = nc_in * nc_out
    ks = jax.random.split(key, 6)

    def lin(kw, kb, fan_in, fan_out):
        bound = 1.0 / jnp.sqrt(fan_in)
        w = jax.random.uniform(kw, (fan_in, fan_out), jnp.float32, -bound, bound)
        b = jax.random.uniform(kb, (1, fan_out), jnp.float32, -bound, bound)
        return w, b

    w1, b1 = lin(ks[0], ks[1], d_in, hidden)
    w2, b2 = lin(ks[2], ks[3], hidden, hidden)
    w3, b3 = lin(ks[4], ks[5], hidden, d_out)
    g1 = jnp.ones((1, hidden), jnp.float32)
    be1 = jnp.zeros((1, hidden), jnp.float32)
    g2 = jnp.ones((1, hidden), jnp.float32)
    be2 = jnp.zeros((1, hidden), jnp.float32)
    return (w1, b1, g1, be1, w2, b2, g2, be2, w3, b3)


def radial_reference(feat, params, nc_in, nc_out):
    (w1, b1, g1, be1, w2, b2, g2, be2, w3, b3) = params
    h = feat @ w1 + b1
    h = jax.nn.silu(h)
    h = _layer_norm(h, g1, be1)
    h = h @ w2 + b2
    h = jax.nn.silu(h)
    h = _layer_norm(h, g2, be2)
    out = h @ w3 + b3
    return out.reshape(*feat.shape[:-1], nc_out, nc_in)


# ----------------------------------------------------------------------------
# self-test
# ----------------------------------------------------------------------------
if __name__ == "__main__":
    B, E = 2, 8
    edge_dim = 16
    hidden = 64
    nc_in, nc_out = 4, 4

    key = jax.random.PRNGKey(0)
    k_params, k_feat, k_feat2 = jax.random.split(key, 3)
    params = init_radial_params(k_params, edge_dim, nc_in, nc_out, hidden)

    # 1) default f32 path (strict check against the exact reference)
    feat = jax.random.normal(k_feat, (B, E, edge_dim + 1), jnp.float32)
    out = jax.block_until_ready(radial_forward(feat, params, nc_in, nc_out))
    ref = radial_reference(feat, params, nc_in, nc_out)
    assert out.shape == (B, E, nc_out, nc_in), out.shape
    assert jnp.allclose(out, ref, atol=1e-5, rtol=1e-5), \
        float(jnp.max(jnp.abs(out - ref)))

    # 2) ragged row count (3*7 = 21 rows) -> exercises the masked partial last
    #    block (no wrapper pad/slice any more)
    feat_r = jax.random.normal(k_feat2, (3, 7, edge_dim + 1), jnp.float32)
    out_r = jax.block_until_ready(
        radial_forward(feat_r, params, nc_in, nc_out, row_tile=2048))
    ref_r = radial_reference(feat_r, params, nc_in, nc_out)
    assert out_r.shape == (3, 7, nc_out, nc_in), out_r.shape
    assert jnp.allclose(out_r, ref_r, atol=1e-5, rtol=1e-5), \
        float(jnp.max(jnp.abs(out_r - ref_r)))
    assert jnp.all(jnp.isfinite(out_r))   # no NaN/Inf leaked from the tail rows

    # 3) bf16 input-storage path (valid on all generations; x@w1 runs on the
    #    MXU which supports bf16 everywhere); compare against a reference that
    #    sees the same bf16-rounded x / w1 (everything else f32).
    out_bf = jax.block_until_ready(
        radial_forward(feat, params, nc_in, nc_out, input_dtype=jnp.bfloat16))
    (w1, b1, g1, be1, w2, b2, g2, be2, w3, b3) = params
    params_q = (w1.astype(jnp.bfloat16).astype(jnp.float32), b1, g1, be1,
                w2, b2, g2, be2, w3, b3)
    feat_q = feat.astype(jnp.bfloat16).astype(jnp.float32)
    ref_bf = radial_reference(feat_q, params_q, nc_in, nc_out)
    assert jnp.allclose(out_bf, ref_bf, atol=1e-3, rtol=1e-3), \
        float(jnp.max(jnp.abs(out_bf - ref_bf)))

    print("KERNEL_OK")
</pallas_src>

<mosaic_0001>
module attributes {stable_mosaic.version = 11 : i64} {
  func.func @_radial_kernel(%arg0: i32, %arg1: memref<8x17xf32, #tpu.memory_space<vmem>>, %arg2: memref<17x64xf32, #tpu.memory_space<vmem>>, %arg3: memref<1x64xf32, #tpu.memory_space<vmem>>, %arg4: memref<64x64xf32, #tpu.memory_space<vmem>>, %arg5: memref<1x64xf32, #tpu.memory_space<vmem>>, %arg6: memref<64x16xf32, #tpu.memory_space<vmem>>, %arg7: memref<1x16xf32, #tpu.memory_space<vmem>>, %arg8: memref<8x16xf32, #tpu.memory_space<vmem>>) attributes {dimension_semantics = [#tpu.dimension_semantics<parallel>], iteration_bounds = array<i64: 2>, scalar_prefetch = 0 : i64, scratch_operands = 0 : i64, tpu.core_type = #tpu.core_type<tc>, window_params = [{transform_indices = @transform_0, window_bounds = array<i64: 8, 17>}, {pipeline_mode = #tpu.pipeline_mode<synchronous>, transform_indices = @transform_1, window_bounds = array<i64: 17, 64>}, {pipeline_mode = #tpu.pipeline_mode<synchronous>, transform_indices = @transform_2, window_bounds = array<i64: 1, 64>}, {pipeline_mode = #tpu.pipeline_mode<synchronous>, transform_indices = @transform_3, window_bounds = array<i64: 64, 64>}, {pipeline_mode = #tpu.pipeline_mode<synchronous>, transform_indices = @transform_4, window_bounds = array<i64: 1, 64>}, {pipeline_mode = #tpu.pipeline_mode<synchronous>, transform_indices = @transform_5, window_bounds = array<i64: 64, 16>}, {pipeline_mode = #tpu.pipeline_mode<synchronous>, transform_indices = @transform_6, window_bounds = array<i64: 1, 16>}, {transform_indices = @transform_7, window_bounds = array<i64: 8, 16>}]} {
    %c0 = arith.constant 0 : index
    %c0_0 = arith.constant 0 : index
    %0 = vector.load %arg1[%c0, %c0_0] : memref<8x17xf32, #tpu.memory_space<vmem>>, vector<8x17xf32>
    %c0_1 = arith.constant 0 : index
    %c0_2 = arith.constant 0 : index
    %1 = vector.load %arg2[%c0_1, %c0_2] : memref<17x64xf32, #tpu.memory_space<vmem>>, vector<17x64xf32>
    %cst = arith.constant dense<0.000000e+00> : vector<8x64xf32>
    %2 = tpu.matmul %0, %1, %cst {dimension_numbers = #tpu.dot_dimension_numbers<[1], [0], [0], [1], [0, 0, 1, 1], [], []>} : vector<8x17xf32>, vector<17x64xf32>, vector<8x64xf32> -> vector<8x64xf32>
    %c0_3 = arith.constant 0 : index
    %c0_4 = arith.constant 0 : index
    %3 = vector.load %arg3[%c0_3, %c0_4] : memref<1x64xf32, #tpu.memory_space<vmem>>, vector<1x64xf32>
    %4 = vector.broadcast %3 : vector<1x64xf32> to vector<8x64xf32>
    %5 = arith.addf %2, %4 : vector<8x64xf32>
    %6 = arith.negf %5 : vector<8x64xf32>
    %7 = math.exp %6 : vector<8x64xf32>
    %cst_5 = arith.constant 1.000000e+00 : f32
    %8 = vector.broadcast %cst_5 : f32 to vector<8x64xf32>
    %9 = arith.addf %8, %7 : vector<8x64xf32>
    %10 = arith.divf %8, %9 : vector<8x64xf32>
    %11 = arith.mulf %5, %10 : vector<8x64xf32>
    %cst_6 = arith.constant dense<0.000000e+00> : vector<8xf32>
    %12 = vector.multi_reduction <add>, %11, %cst_6 [1] : vector<8x64xf32> to vector<8xf32>
    %13 = vector.shape_cast %12 : vector<8xf32> to vector<8x1xf32>
    %cst_7 = arith.constant 6.400000e+01 : f32
    %14 = vector.broadcast %cst_7 : f32 to vector<8x1xf32>
    %15 = arith.divf %13, %14 : vector<8x1xf32>
    %16 = vector.broadcast %15 : vector<8x1xf32> to vector<8x64xf32>
    %17 = arith.subf %11, %16 : vector<8x64xf32>
    %18 = arith.mulf %17, %17 : vector<8x64xf32>
    %cst_8 = arith.constant dense<0.000000e+00> : vector<8xf32>
    %19 = vector.multi_reduction <add>, %18, %cst_8 [1] : vector<8x64xf32> to vector<8xf32>
    %20 = vector.shape_cast %19 : vector<8xf32> to vector<8x1xf32>
    %cst_9 = arith.constant 6.400000e+01 : f32
    %21 = vector.broadcast %cst_9 : f32 to vector<8x1xf32>
    %22 = arith.divf %20, %21 : vector<8x1xf32>
    %23 = vector.broadcast %15 : vector<8x1xf32> to vector<8x64xf32>
    %24 = arith.subf %11, %23 : vector<8x64xf32>
    %cst_10 = arith.constant 9.99999974E-6 : f32
    %25 = vector.broadcast %cst_10 : f32 to vector<8x1xf32>
    %26 = arith.addf %22, %25 : vector<8x1xf32>
    %27 = math.rsqrt %26 : vector<8x1xf32>
    %28 = vector.broadcast %27 : vector<8x1xf32> to vector<8x64xf32>
    %29 = arith.mulf %24, %28 : vector<8x64xf32>
    %c0_11 = arith.constant 0 : index
    %c0_12 = arith.constant 0 : index
    %30 = vector.load %arg4[%c0_11, %c0_12] : memref<64x64xf32, #tpu.memory_space<vmem>>, vector<64x64xf32>
    %cst_13 = arith.constant dense<0.000000e+00> : vector<8x64xf32>
    %31 = tpu.matmul %29, %30, %cst_13 {dimension_numbers = #tpu.dot_dimension_numbers<[1], [0], [0], [1], [0, 0, 1, 1], [], []>} : vector<8x64xf32>, vector<64x64xf32>, vector<8x64xf32> -> vector<8x64xf32>
    %c0_14 = arith.constant 0 : index
    %c0_15 = arith.constant 0 : index
    %32 = vector.load %arg5[%c0_14, %c0_15] : memref<1x64xf32, #tpu.memory_space<vmem>>, vector<1x64xf32>
    %33 = vector.broadcast %32 : vector<1x64xf32> to vector<8x64xf32>
    %34 = arith.addf %31, %33 : vector<8x64xf32>
    %35 = arith.negf %34 : vector<8x64xf32>
    %36 = math.exp %35 : vector<8x64xf32>
    %cst_16 = arith.constant 1.000000e+00 : f32
    %37 = vector.broadcast %cst_16 : f32 to vector<8x64xf32>
    %38 = arith.addf %37, %36 : vector<8x64xf32>
    %39 = arith.divf %37, %38 : vector<8x64xf32>
    %40 = arith.mulf %34, %39 : vector<8x64xf32>
    %cst_17 = arith.constant dense<0.000000e+00> : vector<8xf32>
    %41 = vector.multi_reduction <add>, %40, %cst_17 [1] : vector<8x64xf32> to vector<8xf32>
    %42 = vector.shape_cast %41 : vector<8xf32> to vector<8x1xf32>
    %cst_18 = arith.constant 6.400000e+01 : f32
    %43 = vector.broadcast %cst_18 : f32 to vector<8x1xf32>
    %44 = arith.divf %42, %43 : vector<8x1xf32>
    %45 = vector.broadcast %44 : vector<8x1xf32> to vector<8x64xf32>
    %46 = arith.subf %40, %45 : vector<8x64xf32>
    %47 = arith.mulf %46, %46 : vector<8x64xf32>
    %cst_19 = arith.constant dense<0.000000e+00> : vector<8xf32>
    %48 = vector.multi_reduction <add>, %47, %cst_19 [1] : vector<8x64xf32> to vector<8xf32>
    %49 = vector.shape_cast %48 : vector<8xf32> to vector<8x1xf32>
    %cst_20 = arith.constant 6.400000e+01 : f32
    %50 = vector.broadcast %cst_20 : f32 to vector<8x1xf32>
    %51 = arith.divf %49, %50 : vector<8x1xf32>
    %52 = vector.broadcast %44 : vector<8x1xf32> to vector<8x64xf32>
    %53 = arith.subf %40, %52 : vector<8x64xf32>
    %cst_21 = arith.constant 9.99999974E-6 : f32
    %54 = vector.broadcast %cst_21 : f32 to vector<8x1xf32>
    %55 = arith.addf %51, %54 : vector<8x1xf32>
    %56 = math.rsqrt %55 : vector<8x1xf32>
    %57 = vector.broadcast %56 : vector<8x1xf32> to vector<8x64xf32>
    %58 = arith.mulf %53, %57 : vector<8x64xf32>
    %c0_22 = arith.constant 0 : index
    %c0_23 = arith.constant 0 : index
    %59 = vector.load %arg6[%c0_22, %c0_23] : memref<64x16xf32, #tpu.memory_space<vmem>>, vector<64x16xf32>
    %cst_24 = arith.constant dense<0.000000e+00> : vector<8x16xf32>
    %60 = tpu.matmul %58, %59, %cst_24 {dimension_numbers = #tpu.dot_dimension_numbers<[1], [0], [0], [1], [0, 0, 1, 1], [], []>} : vector<8x64xf32>, vector<64x16xf32>, vector<8x16xf32> -> vector<8x16xf32>
    %c0_25 = arith.constant 0 : index
    %c0_26 = arith.constant 0 : index
    %61 = vector.load %arg7[%c0_25, %c0_26] : memref<1x16xf32, #tpu.memory_space<vmem>>, vector<1x16xf32>
    %62 = vector.broadcast %61 : vector<1x16xf32> to vector<8x16xf32>
    %63 = arith.addf %60, %62 : vector<8x16xf32>
    %c0_27 = arith.constant 0 : index
    %c0_28 = arith.constant 0 : index
    %64 = vector.load %arg8[%c0_27, %c0_28] : memref<8x16xf32, #tpu.memory_space<vmem>>, vector<8x16xf32>
    tpu.vector_store %arg8[%c0_27, %c0_28], %63 {strides = array<i32>} : memref<8x16xf32, #tpu.memory_space<vmem>>, vector<8x16xf32>,
    return
  }
  func.func @transform_0(%arg0: i32) -> (i32, i32) {
    %c0_i32 = arith.constant 0 : i32
    %c0_i32_0 = arith.constant 0 : i32
    return %arg0, %c0_i32 : i32, i32
  }
  func.func @transform_1(%arg0: i32) -> (i32, i32) {
    %c0_i32 = arith.constant 0 : i32
    %c0_i32_0 = arith.constant 0 : i32
    %c0_i32_1 = arith.constant 0 : i32
    return %c0_i32, %c0_i32_0 : i32, i32
  }
  func.func @transform_2(%arg0: i32) -> (i32, i32) {
    %c0_i32 = arith.constant 0 : i32
    %c0_i32_0 = arith.constant 0 : i32
    %c0_i32_1 = arith.constant 0 : i32
    return %c0_i32, %c0_i32_0 : i32, i32
  }
  func.func @transform_3(%arg0: i32) -> (i32, i32) {
    %c0_i32 = arith.constant 0 : i32
    %c0_i32_0 = arith.constant 0 : i32
    %c0_i32_1 = arith.constant 0 : i32
    return %c0_i32, %c0_i32_0 : i32, i32
  }
  func.func @transform_4(%arg0: i32) -> (i32, i32) {
    %c0_i32 = arith.constant 0 : i32
    %c0_i32_0 = arith.constant 0 : i32
    %c0_i32_1 = arith.constant 0 : i32
    return %c0_i32, %c0_i32_0 : i32, i32
  }
  func.func @transform_5(%arg0: i32) -> (i32, i32) {
    %c0_i32 = arith.constant 0 : i32
    %c0_i32_0 = arith.constant 0 : i32
    %c0_i32_1 = arith.constant 0 : i32
    return %c0_i32, %c0_i32_0 : i32, i32
  }
  func.func @transform_6(%arg0: i32) -> (i32, i32) {
    %c0_i32 = arith.constant 0 : i32
    %c0_i32_0 = arith.constant 0 : i32
    %c0_i32_1 = arith.constant 0 : i32
    return %c0_i32, %c0_i32_0 : i32, i32
  }
  func.func @transform_7(%arg0: i32) -> (i32, i32) {
    %c0_i32 = arith.constant 0 : i32
    %c0_i32_0 = arith.constant 0 : i32
    return %arg0, %c0_i32 : i32, i32
  }
}

</mosaic_0001>

<bundles_post_ra>
// kernel: tpu_custom_call.1
= control target key start
LH: loop header
LB: loop body
LE: loop exit
PB: predicated region body
PF: predicated region fallthrough
CT: control target
= control target key end

     0   :  { %12 = vsyncpa [#allocation3], 0  ;;  %s972_s0 = inlined_call_operand.vmem [shape: f32[16,17], index: 0, kind: input, shape index: {}]   ;;  %s973_s1 = inlined_call_operand.hbm [shape: f32[17,64], index: 1, kind: input, shape index: {}]   ;;  %s974_s2 = inlined_call_operand.vmem [shape: f32[1,64], index: 2, kind: input, shape index: {}]   ;;  %s975_s3 = inlined_call_operand.vmem [shape: f32[64,64], index: 3, kind: input, shape index: {}]   ;;  %s976_s4 = inlined_call_operand.vmem [shape: f32[1,64], index: 4, kind: input, shape index: {}]   ;;  %s977_s5 = inlined_call_operand.vmem [shape: f32[64,16], index: 5, kind: input, shape index: {}]   ;;  %s978_s6 = inlined_call_operand.vmem [shape: f32[1,16], index: 6, kind: input, shape index: {}]   ;;  %s979_s7 = inlined_call_operand.hbm [shape: f32[16,16], index: 7, kind: output, shape index: {}]  }
   0x1   :  { %13 = vsyncpa [#allocation4], 0 }
   0x2   :  { %15 = vsyncpa [#allocation4 + $0x1], 0  ;;  %s808_s24 = smov 0   ;;  %s810_s25 = smov 0  }
   0x3   :  { %s812_s26 = smov 0   ;;  %s814_s27 = smov 0  }
   0x4 LB: > { %s829_s28 = sadd.s32 4294967295, %s762_s27   ;;  %s578_s29 = sadd.s32 4294967294, %s762_s27   ;;  %s762_s27 = sphi %s814_s27, %s985_s27   ;;  %s758_s26 = sphi %s812_s26, %s984_s26   ;;  %s754_s25 = sphi %s810_s25, %s983_s25   ;;  %s750_s24 = sphi %s808_s24, %s982_s24  }
   0x5   : > { %s833_s30 = sadd.s32 1, %s762_s27   ;;  %s180_s8 = sadd.s32 1, %s758_s26 }
   0x6   : > { %s177_s9 = ssub.s32 %s762_s27, %s833_s30  ;;  %p190_p0 = scmp.ne.s32.totalorder %s758_s26, %s754_s25 }
   0x7   : > { %p178_p1 = scmp.eq.s32.totalorder %s177_s9, 0  ;;  %p191_p2 = scmp.eq.s32.totalorder %s829_s28, 1 }
   0x8   : > { %p196_p3 = scmp.ne.s32.totalorder %s754_s25, %s750_s24  ;;  %p197_p4 = scmp.eq.s32.totalorder %s578_s29, 1 }
   0x9   : > { %s844_s10 = scalar_select %p178_p1, %s758_s26, %s180_s8  }
   0xa   : > { %p846_p5 = por %p191_p2, %p190_p0  ;;  %p850_p6 = por %p197_p4, %p196_p3 }
   0xb   : > { %p579_p7 = scmp.ge.s32.totalorder %s762_s27, 1  ;;  %p204_p8 = scmp.lt.s32.totalorder %s762_s27, 3 }
   0xc   : > { %p610_p9 = scmp.eq.s32.totalorder %s829_s28, 0  ;;  %s215_s15 = sshll.u32 %s973_s1, 4  ;;  %s216_s15 = int_to_ptr.hbm [resolvable:$true] %s215_s15 }
   0xd   : > { %p205_p10 = pnand %p579_p7, %p204_p8  ;;  %s764_s16 = smov [#allocation2]  }
   0xe   : > { %s217_s17 = sshll.u32 %s764_s16, 4  ;;  %s765_s18 = smov 128   ;;  %s218_s17 = int_to_ptr.vmem [resolvable:$true] %s217_s17 }
   0xf   : > { %p602_p11 = pneg %p205_p10  ;;  %s766_s19 = smov 8  }
  0x10   : > { %255 = sbr.rel (%p205_p10) target bundleno = 1010 (0x3f2), region = 48 }
  0x11   : > { %p603_p12 = pnand %p610_p9, %p602_p11 }
  0x13   : > { %605 = dma.hbm_to_vmem [thread:$0]  (!%p603_p12), %s216_s15, 384, %s218_s17, [#allocation3], %s765_s18, %s765_s18, %s766_s19  }
  0x15   : > { %741 = dma.done.wait (%p610_p9), [#allocation3], 384  }
  0x16   : > { %743 = vsyncadd (%p610_p9), [#allocation3], 4294966912  ;;  %p287_p13 = scmp.lt.s32.totalorder %s829_s28, 1  ;;  %vm303_vm0 = vcmask 1040384   ;;  %v294_v0 = vld [vmem:[#allocation2 + $0x10] sm:$0x1] }
  0x17   : > { %v293_v1 = vld [vmem:[#allocation2 + $0x8] sm:$0xff]  ;;  %586 = vmatpush.msk.msra.mxu0 %vm303_vm0, %v294_v0  ;;  %v292_v2 = vld [vmem:[#allocation2] sm:$0xff]  ;;  %vm299_vm1 = vcmask 138240   ;;  %vm347_vm6 = vcmask 523264   ;;  %v767_v22 = vmov 64.0   ;;  %v384_v34 = vld [vmem:[%s975_s3 + $0x38] sm:$0xff] }
  0x18   : > { %s288_s20 = scalar_select %p287_p13, %s829_s28, 1  ;;  %v649_v4 = vld [vmem:[%s974_s2] ss:$0 sm:$0xff]  ;;  %400 = vmatpush.msra.mxu1 %v384_v34  ;;  %v383_v35 = vld [vmem:[%s975_s3 + $0x30] sm:$0xff]  ;;  %v382_v36 = vld [vmem:[%s975_s3 + $0x28] sm:$0xff] }
  0x19   : > { %321 = vmatpush.msra.mxu0 %v293_v1  ;;  %v381_v37 = vld [vmem:[%s975_s3 + $0x20] sm:$0xff]  ;;  %v380_v38 = vld [vmem:[%s975_s3 + $0x18] sm:$0xff]  ;;  %v379_v39 = vld [vmem:[%s975_s3 + $0x10] sm:$0xff]  ;;  %s284_s19 = sand.u32 1, %s754_s25  }
  0x1a   : > { %s585_s21 = sshll.u32 %s288_s20, 3  ;;  %401 = vmatpush.msra.mxu1 %v383_v35  ;;  %v378_v40 = vld [vmem:[%s975_s3 + $0x8] sm:$0xff]  ;;  %v377_v41 = vld [vmem:[%s975_s3] sm:$0xff]  ;;  %s584_s20 = sshll.u32 %s284_s19, 3 }
  0x1b   : > { %s290_s29 = scalar_lea.vmem %s972_s0, %s585_s21  ;;  %322 = vmatpush.msra.mxu0 %v292_v2  ;;  %v650_v53 = vld [vmem:[%s976_s4] ss:$0 sm:$0xff]  ;;  %s593_s21 = sshll.u32 %s829_s28, 3 }
  0x1c   : > { %v291_v3 = vld [vmem:[%s290_s29] sm:$0xff]  ;;  %402 = vmatpush.msra.mxu1 %v382_v36  ;;  %s502_s29 = scalar_lea.hbm %s979_s7, %s593_s21  ;;  %s286_s13 = scalar_lea.vmem [#allocation5], %s584_s20 }
  0x1d   : > { %587 = vmatmul.msk.f32.vlgmr.msra.gmra.mxu0 %vm299_vm1, %v291_v3  ;;  %s504_s14 = sshll.u32 %s286_s13, 4  ;;  %s506_s15 = sshll.u32 %s502_s29, 4  ;;  %s505_s14 = int_to_ptr.vmem [resolvable:$true] %s504_s14  ;;  %s507_s15 = int_to_ptr.hbm [resolvable:$true] %s506_s15 }
  0x1e   : > { %403 = vmatpush.msra.mxu1 %v381_v37  ;;  %s492_s16 = scalar_lea.sflag [#allocation4], %s284_s19  ;;  %s710_s28 = sshra.s32 %s507_s15, 4  ;;  %s711_s28 = int_to_ptr.hbm [resolvable:$true] %s710_s28 }
  0x1f   : > { %s712_s17 = scalar_lea.hbm %s711_s28, 8  ;;  %s716_s20 = scalar_lea.hbm %s979_s7, 16 }
  0x20   : > { %404 = vmatpush.msra.mxu1 %v380_v38  ;;  %p713_p0 = scmp.ne.s32.totalorder %s711_s28, %s712_s17  ;;  %p717_p3 = scmp.lt.s32.totalorder %s711_s28, %s979_s7 }
  0x21   : > { %p718_p4 = scmp.lt.s32.totalorder %s716_s20, %s712_s17 }
  0x22   : > { %405 = vmatpush.msra.mxu1 %v379_v39  ;;  %p714_p1 = pnand %p713_p0, %p846_p5 }
  0x23   : > { %p719_p7 = por %p718_p4, %p717_p3 }
  0x24   : > { %406 = vmatpush.msra.mxu1 %v378_v40  ;;  %p715_p2 = pneg %p714_p1 }
  0x26   : > { %407 = vmatpush.msra.mxu1 %v377_v41  ;;  %p720_p8 = pnand %p719_p7, %p715_p2 }
  0x9a   : > { %v324_v5 = vpop.f32.mrf.mxu0 }
  0x9b   : > { %v325_v6 = vadd.f32 %v649_v4, %v324_v5 }
  0x9d   : > { %v588_v7 = vmul.f32 -1.442695, %v325_v6 }
  0x9f   : > { %652 = vpow2.f32 %v588_v7 }
  0xa5   : > { %v653_v8 = vpop.eup %652 }
  0xa6   : > { %v330_v9 = vadd.f32 1.0, %v653_v8 }
  0xa8   : > { %654 = vrcp.f32 %v330_v9  ;;  %v342_v13 = vand.u32 2147483648, %v330_v9  ;;  %v340_v15 = vand.u32 2147483647, %v330_v9  ;;  %vm336_vm3 = vweird.f32 %v330_v9 }
  0xa9   : > { %656 = vrcp.f32 %v767_v22 }
  0xaa   : > { %v343_v17 = vor.u32 1.1754944e-38, %v342_v13  ;;  %vm341_vm5 = vcmp.eq.f32.partialorder %v340_v15, 8.507059e+37  ;;  %v460_v13 = vld [vmem:[%s977_s5 + $0x30] sm:$0xff]  ;;  %v458_v15 = vld [vmem:[%s977_s5 + $0x20] sm:$0xff] }
  0xae   : > { %v655_v10 = vpop.eup %654 }
  0xaf   : > { %v332_v11 = vmul.f32 %v655_v10, %v330_v9  ;;  %vm337_vm2 = vweird.f32 %v655_v10  ;;  %v657_v23 = vpop.eup %656 }
  0xb0   : > { %vm338_vm4 = vmor %vm336_vm3, %vm337_vm2  ;;  %v352_v24 = vmul.f32 64.0, %v657_v23  ;;  %vm356_vm7 = vweird.f32 %v657_v23  ;;  %vm489_vm2 = vcmask 130048  }
  0xb1   : > { %v333_v12 = vsub.f32 1.0, %v332_v11 }
  0xb2   : > { %v353_v25 = vsub.f32 1.0, %v352_v24 }
  0xb3   : > { %v334_v14 = vmul.f32 %v655_v10, %v333_v12  ;;  %v461_v12 = vld [vmem:[%s977_s5 + $0x38] sm:$0xff] }
  0xb4   : > { %v354_v26 = vmul.f32 %v657_v23, %v353_v25  ;;  %477 = vmatpush.msra.mxu2 %v461_v12 }
  0xb5   : > { %v335_v16 = vadd.f32 %v655_v10, %v334_v14  ;;  %v459_v14 = vld [vmem:[%s977_s5 + $0x28] sm:$0xff] }
  0xb6   : > { %v355_v27 = vadd.f32 %v657_v23, %v354_v26  ;;  %478 = vmatpush.msra.mxu2 %v460_v13 }
  0xb7   : > { %v339_v18 = vsel %vm338_vm4, %v655_v10, %v335_v16  ;;  %v457_v16 = vld [vmem:[%s977_s5 + $0x18] sm:$0xff] }
  0xb8   : > { %v344_v19 = vsel %vm341_vm5, %v343_v17, %v339_v18  ;;  %v875_v28 = vsel %vm356_vm7, %v657_v23, %v355_v27  ;;  %479 = vmatpush.msra.mxu2 %v459_v14  ;;  %v456_v17 = vld [vmem:[%s977_s5 + $0x10] sm:$0xff]  ;;  %v455_v18 = vld [vmem:[%s977_s5 + $0x8] sm:$0xff] }
  0xb9   : > { %v346_v20 = vmul.f32 %v344_v19, %v325_v6  ;;  %v454_v19 = vld [vmem:[%s977_s5] sm:$0xff] }
  0xba   : > { %480 = vmatpush.msra.mxu2 %v458_v15 }
  0xbb   : > { %v348_v21 = vsel %vm347_vm6, %v346_v20, 0.0 }
  0xbc   : > { %349 = vadd.xlane.f32.xlu0 %v348_v21  ;;  %481 = vmatpush.msra.mxu2 %v457_v16 }
  0xbe   : > { %482 = vmatpush.msra.mxu2 %v456_v17 }
  0xc0   : > { %483 = vmatpush.msra.mxu2 %v455_v18 }
  0xc2   : > { %484 = vmatpush.msra.mxu2 %v454_v19 }
 0x12f   : > { %v350_v29 = vpop.xlane.xlu0 %349 }
 0x130   : > { %v358_v30 = vmul.f32 %v875_v28, %v350_v29 }
 0x132   : > { %v359_v31 = vsub.f32 %v346_v20, %v358_v30 }
 0x134   : > { %v360_v32 = vmul.f32 %v359_v31, %v359_v31 }
 0x136   : > { %v361_v33 = vsel %vm347_vm6, %v360_v32, 0.0 }
 0x137   : > { %362 = vadd.xlane.f32.xlu0 %v361_v33 }
 0x1aa   : > { %v363_v42 = vpop.xlane.xlu0 %362 }
 0x1ab   : > { %v364_v43 = vmul.f32 %v363_v42, %v875_v28 }
 0x1ad   : > { %v365_v44 = vadd.f32 1e-05, %v364_v43 }
 0x1af   : > { %658 = vrsqrt.f32 %v365_v44  ;;  %vm372_vm9 = vweird.f32 %v365_v44 }
 0x1b5   : > { %v659_v45 = vpop.eup %658 }
 0x1b6   : > { %v367_v46 = vmul.f32 %v659_v45, %v365_v44  ;;  %vm373_vm8 = vweird.f32 %v659_v45 }
 0x1b7   : > { %vm374_vm10 = vmor %vm372_vm9, %vm373_vm8 }
 0x1b8   : > { %v368_v47 = vmul.f32 %v659_v45, %v367_v46 }
 0x1ba   : > { %v369_v48 = vmul.f32 0.5, %v368_v47 }
 0x1bc   : > { %v370_v49 = vsub.f32 1.5, %v369_v48 }
 0x1be   : > { %v371_v50 = vmul.f32 %v659_v45, %v370_v49 }
 0x1c0   : > { %v375_v51 = vsel %vm374_vm10, %v659_v45, %v371_v50 }
 0x1c1   : > { %v376_v52 = vmul.f32 %v375_v51, %v359_v31 }
 0x1c3   : > { %589 = vmatmul.msk.f32.vlgmr.msra.gmra.mxu1 %vm347_vm6, %v376_v52 }
 0x240   : > { %v409_v54 = vpop.f32.mrf.mxu1 }
 0x241   : > { %v410_v55 = vadd.f32 %v650_v53, %v409_v54 }
 0x243   : > { %v590_v56 = vmul.f32 -1.442695, %v410_v55 }
 0x245   : > { %660 = vpow2.f32 %v590_v56 }
 0x24b   : > { %v661_v57 = vpop.eup %660 }
 0x24c   : > { %v415_v58 = vadd.f32 1.0, %v661_v57 }
 0x24e   : > { %662 = vrcp.f32 %v415_v58  ;;  %v427_v62 = vand.u32 2147483648, %v415_v58  ;;  %v425_v0 = vand.u32 2147483647, %v415_v58  ;;  %vm421_vm12 = vweird.f32 %v415_v58 }
 0x250   : > { %v428_v2 = vor.u32 1.1754944e-38, %v427_v62  ;;  %vm426_vm14 = vcmp.eq.f32.partialorder %v425_v0, 8.507059e+37 }
 0x254   : > { %v663_v59 = vpop.eup %662 }
 0x255   : > { %v417_v60 = vmul.f32 %v663_v59, %v415_v58  ;;  %vm422_vm11 = vweird.f32 %v663_v59 }
 0x256   : > { %vm423_vm13 = vmor %vm421_vm12, %vm422_vm11 }
 0x257   : > { %v418_v61 = vsub.f32 1.0, %v417_v60 }
 0x259   : > { %v419_v63 = vmul.f32 %v663_v59, %v418_v61 }
 0x25b   : > { %v420_v1 = vadd.f32 %v663_v59, %v419_v63 }
 0x25d   : > { %v424_v3 = vsel %vm423_vm13, %v663_v59, %v420_v1 }
 0x25e   : > { %v429_v4 = vsel %vm426_vm14, %v428_v2, %v424_v3 }
 0x25f   : > { %v431_v5 = vmul.f32 %v429_v4, %v410_v55 }
 0x261   : > { %v432_v6 = vsel %vm347_vm6, %v431_v5, 0.0 }
 0x262   : > { %433 = vadd.xlane.f32.xlu1 %v432_v6 }
 0x2d5   : > { %v434_v7 = vpop.xlane.xlu1 %433 }
 0x2d6   : > { %v435_v8 = vmul.f32 %v434_v7, %v875_v28 }
 0x2d8   : > { %v436_v9 = vsub.f32 %v431_v5, %v435_v8 }
 0x2da   : > { %v437_v10 = vmul.f32 %v436_v9, %v436_v9 }
 0x2dc   : > { %v438_v11 = vsel %vm347_vm6, %v437_v10, 0.0 }
 0x2dd   : > { %439 = vadd.xlane.f32.xlu1 %v438_v11 }
 0x350   : > { %v440_v20 = vpop.xlane.xlu1 %439 }
 0x351   : > { %v441_v21 = vmul.f32 %v440_v20, %v875_v28  ;;  %v651_v28 = vld [vmem:[%s978_s6] ss:$0 sm:$0xff] }
 0x353   : > { %v442_v22 = vadd.f32 1e-05, %v441_v21 }
 0x355   : > { %664 = vrsqrt.f32 %v442_v22  ;;  %vm449_vm0 = vweird.f32 %v442_v22 }
 0x35b   : > { %v665_v23 = vpop.eup %664 }
 0x35c   : > { %v444_v24 = vmul.f32 %v665_v23, %v442_v22  ;;  %vm450_vm15 = vweird.f32 %v665_v23 }
 0x35d   : > { %vm451_vm1 = vmor %vm449_vm0, %vm450_vm15 }
 0x35e   : > { %v445_v25 = vmul.f32 %v665_v23, %v444_v24 }
 0x360   : > { %v446_v26 = vmul.f32 0.5, %v445_v25 }
 0x362   : > { %v447_v27 = vsub.f32 1.5, %v446_v26 }
 0x364   : > { %v448_v29 = vmul.f32 %v665_v23, %v447_v27 }
 0x366   : > { %v452_v30 = vsel %vm451_vm1, %v665_v23, %v448_v29 }
 0x367   : > { %v453_v31 = vmul.f32 %v452_v30, %v436_v9 }
 0x369   : > { %591 = vmatmul.msk.f32.vlgmr.msra.gmra.mxu2 %vm347_vm6, %v453_v31 }
 0x3ec   : > { %v486_v32 = vpop.f32.mrf.mxu2 }
 0x3ed   : > { %v487_v33 = vadd.f32 %v651_v28, %v486_v32 }
 0x3ef   : > { %490 = vst.msk [vmem:[%s286_s13] sm:$0xff] %vm489_vm2, %v487_v33 }
 0x3f0   : > { %723 = shalt.err (!%p720_p8)
}
 0x3f1   : > { %600 = dma.vmem_to_hbm [thread:$0]  (%p846_p5), %s505_s14, 128, %s507_s15, %s492_s16  }
 0x3f2 PF: > { %p612_p9 = scmp.ge.s32.totalorder %s762_s27, 2  ;;  %s518_s19 = sand.u32 1, %s750_s24  }
 0x3f3   : > { %s519_s29 = scalar_lea.sflag [#allocation4], %s518_s19 }
 0x3f4   : > { %p607_p10 = pnand %p612_p9, %p850_p6 }
 0x3f6   : > { %p608_p11 = pneg %p607_p10 }
 0x3f8   : > { %745 = dma.done.wait (%p608_p11), %s519_s29, 128  }
 0x3f9   : > { %747 = vsyncadd (%p608_p11), %s519_s29, 4294967168  ;;  %p18_p12 = scmp.ge.s32.totalorder %s833_s30, 4   ;;  %s982_s24 = smov %s754_s25 }
 0x3fa   : > { %s983_s25 = smov %s758_s26  ;;  %s984_s26 = smov %s844_s10 }
 0x3fb   : > { %s985_s27 = smov %s833_s30  ;;  %20 = sbr.rel (!%p18_p12) target bundleno = 4 (0x4), region = 88 }
 0x400   :  { %525 = vsyncpa [#allocation3], 1 }
 0x401   :  { %527 = vsyncpa [#allocation3 + $0x1], 1 }
 0x402   :  { %528 = vsyncpa [#allocation4], 1 }
 0x403   :  { %530 = vsyncpa [#allocation4 + $0x1], 1 }

</bundles_post_ra>
